<compile_context>
chip_gen: v5e
topology: v5e:2x2
jax: 0.10.0
libtpu: 0.0.40
codegen_flags: <defaults>
</compile_context>

<pallas_src>
import functools

import jax
import jax.numpy as jnp
from jax.experimental import pallas as pl
from jax.experimental.pallas import tpu as pltpu


def _round_up(x, m):
    return ((x + m - 1) // m) * m


def _pick_tb(b16, cap=512):
    """Largest multiple of 16 that divides b16, <= cap, and (when the batch is
    big enough) leaves >= 2 grid steps so v7x's two TensorCores both work."""
    upper = min(b16, cap)
    if b16 >= 32:
        upper = min(upper, b16 // 2)     # guarantee >= 2 parallel grid steps
    tb = max(16, (upper // 16) * 16)
    while b16 % tb != 0:                 # b16 is a multiple of 16 -> terminates
        tb -= 16
    return tb


@functools.lru_cache(maxsize=None)
def _make_mlp_kernel(nlayers):
    """Build a Pallas kernel for a fixed number of hidden layers."""

    def kernel(*refs):
        # refs = (x, w_hidden_0..w_hidden_{nlayers-1}, w_last, b_last, y)
        x_ref = refs[0]
        hidden_w_refs = refs[1:1 + nlayers]
        wl_ref = refs[1 + nlayers]
        bl_ref = refs[2 + nlayers]
        y_ref = refs[3 + nlayers]

        # Activations fed to the MXU in bf16; accumulate in f32.
        u = x_ref[...].astype(jnp.bfloat16)
        for w_ref in hidden_w_refs:
            # Weights pre-transposed to (in, out): no in-kernel transpose.
            z = jnp.dot(u, w_ref[...], preferred_element_type=jnp.float32)
            # Sigmoid evaluated in f32 (EUP exp), re-cast for the next MXU op.
            u = jax.nn.sigmoid(z).astype(jnp.bfloat16)

        # Final head: (nhid_pad, 128) bf16 weight + (1, 128) f32 bias.
        y = jnp.dot(u, wl_ref[...], preferred_element_type=jnp.float32)
        y_ref[...] = y + bl_ref[...]

    return kernel


def pack_params(params, nlayers, lane=128):
    """One-time parameter packing: transpose to (in, out), cast to bf16, and
    zero-pad nhid / n_out to lane-dense 128 multiples. Call ONCE per model."""
    hidden_raw = list(params["hidden_ws"][:nlayers])
    nhid = hidden_raw[0].shape[0]
    nhid_pad = _round_up(nhid, lane)

    hidden_ws = []
    for li, w in enumerate(hidden_raw):          # torch layout (out, in)
        wt = w.T.astype(jnp.bfloat16)            # (in, out)
        in_dim = wt.shape[0]
        in_pad = in_dim if li == 0 else nhid_pad  # layers >0 see padded activations
        hidden_ws.append(
            jnp.pad(wt, ((0, in_pad - in_dim), (0, nhid_pad - nhid))))

    last_ws, last_bs, n_outs = [], [], []
    for wl, bl in zip(params["last_w"], params["last_b"]):
        n_out = wl.shape[0]
        n_out_pad = _round_up(n_out, lane)
        last_ws.append(
            jnp.pad(wl.T.astype(jnp.bfloat16),
                    ((0, nhid_pad - nhid), (0, n_out_pad - n_out))))
        last_bs.append(
            jnp.pad(bl.astype(jnp.float32), (0, n_out_pad - n_out)).reshape(1, -1))
        n_outs.append(int(n_out))

    return {
        "hidden_ws": tuple(hidden_ws),
        "last_ws": tuple(last_ws),
        "last_bs": tuple(last_bs),
        "n_outs": tuple(n_outs),
    }


@functools.partial(jax.jit, static_argnames=("nlayers", "n_out"))
def _mlp_forward_packed(x, hidden_ws, head_w, head_b, *, nlayers, n_out):
    """Forward pass on pre-packed parameters for one (static) task head."""
    B = x.shape[0]
    xf = x.reshape(B, -1)                         # torch: x.view(x.size(0), -1)
    F = xf.shape[1]
    nhid_pad = hidden_ws[0].shape[1]
    n_out_pad = head_w.shape[1]

    # Pad the batch only to the bf16 sublane multiple (16); no tile-sized copy.
    b16 = _round_up(max(B, 16), 16)
    if b16 != B:
        xf = jnp.pad(xf, ((0, b16 - B), (0, 0)))
    tb = _pick_tb(b16)

    kernel = _make_mlp_kernel(nlayers)

    in_specs = [pl.BlockSpec((tb, F), lambda i: (i, 0))]
    in_specs += [pl.BlockSpec(w.shape, lambda i: (0, 0)) for w in hidden_ws]
    in_specs += [
        pl.BlockSpec((nhid_pad, n_out_pad), lambda i: (0, 0)),
        pl.BlockSpec((1, n_out_pad), lambda i: (0, 0)),
    ]

    flops = 2 * b16 * (F * nhid_pad
                       + nhid_pad * nhid_pad * (nlayers - 1)
                       + nhid_pad * n_out_pad)
    transcendentals = b16 * nhid_pad * nlayers
    bytes_accessed = (b16 * F * xf.dtype.itemsize
                      + sum(int(w.size) * 2 for w in hidden_ws)
                      + int(head_w.size) * 2 + int(head_b.size) * 4
                      + b16 * n_out_pad * 4)

    fn = pl.pallas_call(
        kernel,
        out_shape=jax.ShapeDtypeStruct((b16, n_out_pad), jnp.float32),
        grid=(b16 // tb,),
        in_specs=in_specs,
        out_specs=pl.BlockSpec((tb, n_out_pad), lambda i: (i, 0)),
        compiler_params=pltpu.CompilerParams(
            dimension_semantics=("parallel",)),
        cost_estimate=pl.CostEstimate(
            flops=flops,
            transcendentals=transcendentals,
            bytes_accessed=bytes_accessed),
    )
    y_pad = fn(xf, *hidden_ws, head_w, head_b)
    # TODO(synk): if F or nhid scale far beyond VMEM (esp. v7x's 64 MiB), tile
    # the contraction (grid over K, f32 accumulator scratch) and re-derive tb.
    # TODO(synk): if the producer of x can emit bf16, pass it through as-is to
    # halve the dominant HBM traffic (do NOT add a wrapper-side cast).
    return y_pad[:B, :n_out]


def mlp_forward(x, t, packed, nlayers):
    """Run the MLP forward pass for task head `t` (static Python int)."""
    return _mlp_forward_packed(
        x, packed["hidden_ws"], packed["last_ws"][t], packed["last_bs"][t],
        nlayers=nlayers, n_out=packed["n_outs"][t])


def _reference_forward(x, t, params, nlayers):
    """Pure-JAX reference mirroring the kernel's bf16-input / f32-acc math."""
    u = x.reshape(x.shape[0], -1).astype(jnp.float32)
    for w in params["hidden_ws"][:nlayers]:
        wb = w.astype(jnp.bfloat16).astype(jnp.float32)
        ub = u.astype(jnp.bfloat16).astype(jnp.float32)
        u = jax.nn.sigmoid(ub @ wb.T)
    wl = params["last_w"][t].astype(jnp.bfloat16).astype(jnp.float32)
    ub = u.astype(jnp.bfloat16).astype(jnp.float32)
    return ub @ wl.T + params["last_b"][t].astype(jnp.float32)


if __name__ == "__main__":
    # Module configuration (synthetic, deterministic).
    B = 2
    ncha, size, size2 = 4, 16, 16          # inputsize
    F = ncha * size * size2                # 1024
    nhid = 32
    nlayers = 2                            # exercises fc1 + fc2
    taskcla = [(0, 10), (1, 5)]            # args.multi_output = True
    t = 1                                  # evaluate head for task 1

    key = jax.random.PRNGKey(0)
    kx, k1, k2, k3, kwl, kbl = jax.random.split(key, 6)

    x = jax.random.normal(kx, (B, ncha, size, size2), dtype=jnp.float32)

    # Deterministic parameter init (PyTorch Linear weight shapes: (out, in)).
    hidden_ws = [
        0.05 * jax.random.normal(k1, (nhid, F), dtype=jnp.float32),     # fc1
        0.05 * jax.random.normal(k2, (nhid, nhid), dtype=jnp.float32),  # fc2
        0.05 * jax.random.normal(k3, (nhid, nhid), dtype=jnp.float32),  # fc3 (unused, nlayers=2)
    ]
    last_w = [
        0.05 * jax.random.normal(jax.random.fold_in(kwl, i), (n, nhid), dtype=jnp.float32)
        for i, (_, n) in enumerate(taskcla)
    ]
    last_b = [
        0.05 * jax.random.normal(jax.random.fold_in(kbl, i), (n,), dtype=jnp.float32)
        for i, (_, n) in enumerate(taskcla)
    ]
    params = {"hidden_ws": hidden_ws, "last_w": last_w, "last_b": last_b}

    # One-time packing (transpose / bf16 / lane padding) -- NOT per forward.
    packed = pack_params(params, nlayers)
    packed = jax.tree_util.tree_map(
        lambda a: jax.block_until_ready(a) if isinstance(a, jax.Array) else a,
        packed)

    y = mlp_forward(x, t, packed, nlayers)
    y = jax.block_until_ready(y)

    y_ref = _reference_forward(x, t, params, nlayers)
    assert y.shape == (B, taskcla[t][1])
    assert jnp.allclose(y, y_ref, atol=1e-3, rtol=1e-3), "mismatch vs reference"

    print("KERNEL_OK")
</pallas_src>

<mosaic_0001>
module attributes {stable_mosaic.version = 11 : i64} {
  func.func @kernel(%arg0: i32, %arg1: memref<16x1024xf32, #tpu.memory_space<vmem>>, %arg2: memref<1024x128xbf16, #tpu.memory_space<vmem>>, %arg3: memref<128x128xbf16, #tpu.memory_space<vmem>>, %arg4: memref<128x128xbf16, #tpu.memory_space<vmem>>, %arg5: memref<1x128xf32, #tpu.memory_space<vmem>>, %arg6: memref<16x128xf32, #tpu.memory_space<vmem>>) attributes {dimension_semantics = [#tpu.dimension_semantics<parallel>], iteration_bounds = array<i64: 1>, scalar_prefetch = 0 : i64, scratch_operands = 0 : i64, tpu.core_type = #tpu.core_type<tc>, window_params = [{transform_indices = @transform_0, window_bounds = array<i64: 16, 1024>}, {pipeline_mode = #tpu.pipeline_mode<synchronous>, transform_indices = @transform_1, window_bounds = array<i64: 1024, 128>}, {pipeline_mode = #tpu.pipeline_mode<synchronous>, transform_indices = @transform_2, window_bounds = array<i64: 128, 128>}, {pipeline_mode = #tpu.pipeline_mode<synchronous>, transform_indices = @transform_3, window_bounds = array<i64: 128, 128>}, {pipeline_mode = #tpu.pipeline_mode<synchronous>, transform_indices = @transform_4, window_bounds = array<i64: 1, 128>}, {transform_indices = @transform_5, window_bounds = array<i64: 16, 128>}]} {
    %c0 = arith.constant 0 : index
    %c0_0 = arith.constant 0 : index
    %0 = vector.load %arg1[%c0, %c0_0] : memref<16x1024xf32, #tpu.memory_space<vmem>>, vector<16x1024xf32>
    %1 = arith.truncf %0 : vector<16x1024xf32> to vector<16x1024xbf16>
    %c0_1 = arith.constant 0 : index
    %c0_2 = arith.constant 0 : index
    %2 = vector.load %arg2[%c0_1, %c0_2] : memref<1024x128xbf16, #tpu.memory_space<vmem>>, vector<1024x128xbf16>
    %cst = arith.constant dense<0.000000e+00> : vector<16x128xf32>
    %3 = tpu.matmul %1, %2, %cst {dimension_numbers = #tpu.dot_dimension_numbers<[1], [0], [0], [1], [0, 0, 1, 1], [], []>} : vector<16x1024xbf16>, vector<1024x128xbf16>, vector<16x128xf32> -> vector<16x128xf32>
    %4 = arith.negf %3 : vector<16x128xf32>
    %5 = math.exp %4 : vector<16x128xf32>
    %cst_3 = arith.constant 1.000000e+00 : f32
    %6 = vector.broadcast %cst_3 : f32 to vector<16x128xf32>
    %7 = arith.addf %6, %5 : vector<16x128xf32>
    %8 = arith.divf %6, %7 : vector<16x128xf32>
    %9 = arith.truncf %8 : vector<16x128xf32> to vector<16x128xbf16>
    %c0_4 = arith.constant 0 : index
    %c0_5 = arith.constant 0 : index
    %10 = vector.load %arg3[%c0_4, %c0_5] : memref<128x128xbf16, #tpu.memory_space<vmem>>, vector<128x128xbf16>
    %cst_6 = arith.constant dense<0.000000e+00> : vector<16x128xf32>
    %11 = tpu.matmul %9, %10, %cst_6 {dimension_numbers = #tpu.dot_dimension_numbers<[1], [0], [0], [1], [0, 0, 1, 1], [], []>} : vector<16x128xbf16>, vector<128x128xbf16>, vector<16x128xf32> -> vector<16x128xf32>
    %12 = arith.negf %11 : vector<16x128xf32>
    %13 = math.exp %12 : vector<16x128xf32>
    %cst_7 = arith.constant 1.000000e+00 : f32
    %14 = vector.broadcast %cst_7 : f32 to vector<16x128xf32>
    %15 = arith.addf %14, %13 : vector<16x128xf32>
    %16 = arith.divf %14, %15 : vector<16x128xf32>
    %17 = arith.truncf %16 : vector<16x128xf32> to vector<16x128xbf16>
    %c0_8 = arith.constant 0 : index
    %c0_9 = arith.constant 0 : index
    %18 = vector.load %arg4[%c0_8, %c0_9] : memref<128x128xbf16, #tpu.memory_space<vmem>>, vector<128x128xbf16>
    %cst_10 = arith.constant dense<0.000000e+00> : vector<16x128xf32>
    %19 = tpu.matmul %17, %18, %cst_10 {dimension_numbers = #tpu.dot_dimension_numbers<[1], [0], [0], [1], [0, 0, 1, 1], [], []>} : vector<16x128xbf16>, vector<128x128xbf16>, vector<16x128xf32> -> vector<16x128xf32>
    %c0_11 = arith.constant 0 : index
    %c0_12 = arith.constant 0 : index
    %20 = vector.load %arg5[%c0_11, %c0_12] : memref<1x128xf32, #tpu.memory_space<vmem>>, vector<1x128xf32>
    %21 = vector.broadcast %20 : vector<1x128xf32> to vector<16x128xf32>
    %22 = arith.addf %19, %21 : vector<16x128xf32>
    %c0_13 = arith.constant 0 : index
    %c0_14 = arith.constant 0 : index
    %23 = vector.load %arg6[%c0_13, %c0_14] : memref<16x128xf32, #tpu.memory_space<vmem>>, vector<16x128xf32>
    tpu.vector_store %arg6[%c0_13, %c0_14], %22 {strides = array<i32>} : memref<16x128xf32, #tpu.memory_space<vmem>>, vector<16x128xf32>,
    return
  }
  func.func @transform_0(%arg0: i32) -> (i32, i32) {
    %c0_i32 = arith.constant 0 : i32
    %c0_i32_0 = arith.constant 0 : i32
    return %arg0, %c0_i32 : i32, i32
  }
  func.func @transform_1(%arg0: i32) -> (i32, i32) {
    %c0_i32 = arith.constant 0 : i32
    %c0_i32_0 = arith.constant 0 : i32
    %c0_i32_1 = arith.constant 0 : i32
    return %c0_i32, %c0_i32_0 : i32, i32
  }
  func.func @transform_2(%arg0: i32) -> (i32, i32) {
    %c0_i32 = arith.constant 0 : i32
    %c0_i32_0 = arith.constant 0 : i32
    %c0_i32_1 = arith.constant 0 : i32
    return %c0_i32, %c0_i32_0 : i32, i32
  }
  func.func @transform_3(%arg0: i32) -> (i32, i32) {
    %c0_i32 = arith.constant 0 : i32
    %c0_i32_0 = arith.constant 0 : i32
    %c0_i32_1 = arith.constant 0 : i32
    return %c0_i32, %c0_i32_0 : i32, i32
  }
  func.func @transform_4(%arg0: i32) -> (i32, i32) {
    %c0_i32 = arith.constant 0 : i32
    %c0_i32_0 = arith.constant 0 : i32
    %c0_i32_1 = arith.constant 0 : i32
    return %c0_i32, %c0_i32_0 : i32, i32
  }
  func.func @transform_5(%arg0: i32) -> (i32, i32) {
    %c0_i32 = arith.constant 0 : i32
    %c0_i32_0 = arith.constant 0 : i32
    return %arg0, %c0_i32 : i32, i32
  }
}

</mosaic_0001>

<bundles_post_ra>
// kernel: _mlp_forward_packed.1
= control target key start
LH: loop header
LB: loop body
LE: loop exit
PB: predicated region body
PF: predicated region fallthrough
CT: control target
= control target key end

     0   :  { %10 = vsyncpa [#allocation3], 0  ;;  %s1379_s21 = smov [#allocation2]   ;;  %s1380_s23 = smov 64   ;;  %s1520_s0 = inlined_call_operand.vmem [shape: f32[16,1024], index: 0, kind: input, shape index: {}]   ;;  %s1521_s1 = inlined_call_operand.hbm [shape: bf16[1024,128], index: 1, kind: input, shape index: {}]   ;;  %s1522_s2 = inlined_call_operand.vmem [shape: bf16[128,128], index: 2, kind: input, shape index: {}]   ;;  %s1523_s3 = inlined_call_operand.vmem [shape: bf16[128,128], index: 3, kind: input, shape index: {}]   ;;  %s1524_s4 = inlined_call_operand.vmem [shape: f32[1,128], index: 4, kind: input, shape index: {}]   ;;  %s1525_s5 = inlined_call_operand.vmem [shape: f32[16,128], index: 5, kind: output, shape index: {}]  }
   0x1   :  { %s17_s20 = sshll.u32 %s1521_s1, 4  ;;  %s19_s22 = sshll.u32 %s1379_s21, 4  ;;  %s18_s20 = int_to_ptr.hbm [resolvable:$true] %s17_s20  ;;  %s20_s22 = int_to_ptr.vmem [resolvable:$true] %s19_s22 }
   0x2   :  { %s1381_s24 = smov 4  }
   0x3   :  { %25 = dma.hbm_to_vmem [thread:$0]  %s18_s20, 8192, %s20_s22, [#allocation3], %s1380_s23, %s1380_s23, %s1381_s24  }
   0x4   :  { %1377 = dma.done.wait [#allocation3], 8192  }
   0x5   :  { %1378 = vsyncadd [#allocation3], 4294959104  ;;  %v1260_v0 = vld [vmem:[#allocation2 + $0x38] sm:$0xff]  ;;  %v1259_v4 = vld [vmem:[#allocation2 + $0x30] sm:$0xff] }
   0x6   :  { %v1268_v1 = vld [vmem:[#allocation2 + $0x78] sm:$0xff]  ;;  %572 = vmatpush.bf16.msra.mxu0 %v1260_v0  ;;  %v1267_v5 = vld [vmem:[#allocation2 + $0x70] sm:$0xff]  ;;  %v1258_v8 = vld [vmem:[#allocation2 + $0x28] sm:$0xff] }
   0x7   :  { %v1276_v2 = vld [vmem:[#allocation2 + $0xb8] sm:$0xff]  ;;  %586 = vmatpush.bf16.msra.mxu1 %v1268_v1  ;;  %v1275_v6 = vld [vmem:[#allocation2 + $0xb0] sm:$0xff]  ;;  %v1266_v9 = vld [vmem:[#allocation2 + $0x68] sm:$0xff] }
   0x8   :  { %v1284_v3 = vld [vmem:[#allocation2 + $0xf8] sm:$0xff]  ;;  %600 = vmatpush.bf16.msra.mxu2 %v1276_v2  ;;  %v1283_v7 = vld [vmem:[#allocation2 + $0xf0] sm:$0xff]  ;;  %v1274_v10 = vld [vmem:[#allocation2 + $0xa8] sm:$0xff] }
   0x9   :  { %614 = vmatpush.bf16.msra.mxu3 %v1284_v3  ;;  %v1282_v11 = vld [vmem:[#allocation2 + $0xe8] sm:$0xff]  ;;  %v1257_v12 = vld [vmem:[#allocation2 + $0x20] sm:$0xff]  ;;  %v1256_v16 = vld [vmem:[#allocation2 + $0x18] sm:$0xff] }
   0xa   :  { %573 = vmatpush.bf16.msra.mxu0 %v1259_v4  ;;  %v1265_v13 = vld [vmem:[#allocation2 + $0x60] sm:$0xff]  ;;  %v1264_v17 = vld [vmem:[#allocation2 + $0x58] sm:$0xff]  ;;  %v1255_v20 = vld [vmem:[#allocation2 + $0x10] sm:$0xff] }
   0xb   :  { %587 = vmatpush.bf16.msra.mxu1 %v1267_v5  ;;  %v1273_v14 = vld [vmem:[#allocation2 + $0xa0] sm:$0xff]  ;;  %v1272_v18 = vld [vmem:[#allocation2 + $0x98] sm:$0xff]  ;;  %v1263_v21 = vld [vmem:[#allocation2 + $0x50] sm:$0xff] }
   0xc   :  { %601 = vmatpush.bf16.msra.mxu2 %v1275_v6  ;;  %v1281_v15 = vld [vmem:[#allocation2 + $0xe0] sm:$0xff]  ;;  %v1280_v19 = vld [vmem:[#allocation2 + $0xd8] sm:$0xff]  ;;  %v1271_v22 = vld [vmem:[#allocation2 + $0x90] sm:$0xff] }
   0xd   :  { %615 = vmatpush.bf16.msra.mxu3 %v1283_v7  ;;  %v1279_v23 = vld [vmem:[#allocation2 + $0xd0] sm:$0xff]  ;;  %v1254_v24 = vld [vmem:[#allocation2 + $0x8] sm:$0xff]  ;;  %v1253_v28 = vld [vmem:[#allocation2] sm:$0xff] }
   0xe   :  { %574 = vmatpush.bf16.msra.mxu0 %v1258_v8  ;;  %v1262_v25 = vld [vmem:[#allocation2 + $0x48] sm:$0xff]  ;;  %v1261_v29 = vld [vmem:[#allocation2 + $0x40] sm:$0xff]  ;;  %v1292_v32 = vld [vmem:[#allocation2 + $0x138] sm:$0xff] }
   0xf   :  { %588 = vmatpush.bf16.msra.mxu1 %v1266_v9  ;;  %v1270_v26 = vld [vmem:[#allocation2 + $0x88] sm:$0xff]  ;;  %v1269_v30 = vld [vmem:[#allocation2 + $0x80] sm:$0xff]  ;;  %v1300_v33 = vld [vmem:[#allocation2 + $0x178] sm:$0xff] }
  0x10   :  { %602 = vmatpush.bf16.msra.mxu2 %v1274_v10  ;;  %v1278_v27 = vld [vmem:[#allocation2 + $0xc8] sm:$0xff]  ;;  %v1277_v31 = vld [vmem:[#allocation2 + $0xc0] sm:$0xff]  ;;  %v38_v34 = vld [vmem:[%s1520_s0 + $0x10] sm:$0xff] }
  0x11   :  { %616 = vmatpush.bf16.msra.mxu3 %v1282_v11  ;;  %v46_v35 = vld [vmem:[%s1520_s0 + $0x50] sm:$0xff]  ;;  %v39_v36 = vld [vmem:[%s1520_s0 + $0x18] sm:$0xff]  ;;  %v36_v38 = vld [vmem:[%s1520_s0] sm:$0xff] }
  0x12   :  { %575 = vmatpush.bf16.msra.mxu0 %v1257_v12  ;;  %v47_v37 = vld [vmem:[%s1520_s0 + $0x58] sm:$0xff]  ;;  %v44_v39 = vld [vmem:[%s1520_s0 + $0x40] sm:$0xff]  ;;  %v37_v40 = vld [vmem:[%s1520_s0 + $0x8] sm:$0xff]  ;;  %v54_v44 = vpack.c.bf16 %v46_v35, %v38_v34 }
  0x13   :  { %589 = vmatpush.bf16.msra.mxu1 %v1265_v13  ;;  %v45_v41 = vld [vmem:[%s1520_s0 + $0x48] sm:$0xff]  ;;  %v1308_v42 = vld [vmem:[#allocation2 + $0x1b8] sm:$0xff]  ;;  %v55_v45 = vpack.c.bf16 %v47_v37, %v39_v36  ;;  %v52_v46 = vpack.c.bf16 %v44_v39, %v36_v38  ;;  %v1291_v48 = vld [vmem:[#allocation2 + $0x130] sm:$0xff] }
  0x14   :  { %603 = vmatpush.bf16.msra.mxu2 %v1273_v14  ;;  %v1316_v43 = vld [vmem:[#allocation2 + $0x1f8] sm:$0xff]  ;;  %v53_v47 = vpack.c.bf16 %v45_v41, %v37_v40  ;;  %v1299_v49 = vld [vmem:[#allocation2 + $0x170] sm:$0xff]  ;;  %v1290_v52 = vld [vmem:[#allocation2 + $0x128] sm:$0xff] }
  0x15   :  { %617 = vmatpush.bf16.msra.mxu3 %v1281_v15  ;;  %v1307_v50 = vld [vmem:[#allocation2 + $0x1b0] sm:$0xff]  ;;  %v1298_v53 = vld [vmem:[#allocation2 + $0x168] sm:$0xff]  ;;  %v1289_v56 = vld [vmem:[#allocation2 + $0x120] sm:$0xff] }
  0x16   :  { %576 = vmatpush.bf16.msra.mxu0 %v1256_v16  ;;  %v1315_v51 = vld [vmem:[#allocation2 + $0x1f0] sm:$0xff]  ;;  %v1306_v54 = vld [vmem:[#allocation2 + $0x1a8] sm:$0xff]  ;;  %v1297_v57 = vld [vmem:[#allocation2 + $0x160] sm:$0xff] }
  0x17   :  { %590 = vmatpush.bf16.msra.mxu1 %v1264_v17  ;;  %v1314_v55 = vld [vmem:[#allocation2 + $0x1e8] sm:$0xff]  ;;  %v1305_v58 = vld [vmem:[#allocation2 + $0x1a0] sm:$0xff]  ;;  %v1288_v60 = vld [vmem:[#allocation2 + $0x118] sm:$0xff] }
  0x18   :  { %604 = vmatpush.bf16.msra.mxu2 %v1272_v18  ;;  %v1313_v59 = vld [vmem:[#allocation2 + $0x1e0] sm:$0xff]  ;;  %v1296_v61 = vld [vmem:[#allocation2 + $0x158] sm:$0xff]  ;;  %v1287_v0 = vld [vmem:[#allocation2 + $0x110] sm:$0xff] }
  0x19   :  { %618 = vmatpush.bf16.msra.mxu3 %v1280_v19  ;;  %v1304_v62 = vld [vmem:[#allocation2 + $0x198] sm:$0xff]  ;;  %v1295_v1 = vld [vmem:[#allocation2 + $0x150] sm:$0xff]  ;;  %v1286_v4 = vld [vmem:[#allocation2 + $0x108] sm:$0xff] }
  0x1a   :  { %577 = vmatpush.bf16.msra.mxu0 %v1255_v20  ;;  %v1312_v63 = vld [vmem:[#allocation2 + $0x1d8] sm:$0xff]  ;;  %v1303_v2 = vld [vmem:[#allocation2 + $0x190] sm:$0xff]  ;;  %v1294_v5 = vld [vmem:[#allocation2 + $0x148] sm:$0xff] }
  0x1b   :  { %591 = vmatpush.bf16.msra.mxu1 %v1263_v21  ;;  %v1311_v3 = vld [vmem:[#allocation2 + $0x1d0] sm:$0xff]  ;;  %v1302_v6 = vld [vmem:[#allocation2 + $0x188] sm:$0xff]  ;;  %v1285_v8 = vld [vmem:[#allocation2 + $0x100] sm:$0xff] }
  0x1c   :  { %605 = vmatpush.bf16.msra.mxu2 %v1271_v22  ;;  %v1310_v7 = vld [vmem:[#allocation2 + $0x1c8] sm:$0xff]  ;;  %v1293_v9 = vld [vmem:[#allocation2 + $0x140] sm:$0xff]  ;;  %v42_v16 = vld [vmem:[%s1520_s0 + $0x30] sm:$0xff] }
  0x1d   :  { %619 = vmatpush.bf16.msra.mxu3 %v1279_v23  ;;  %v1301_v10 = vld [vmem:[#allocation2 + $0x180] sm:$0xff]  ;;  %v41_v14 = vld [vmem:[%s1520_s0 + $0x28] sm:$0xff]  ;;  %v50_v17 = vld [vmem:[%s1520_s0 + $0x70] sm:$0xff] }
  0x1e   :  { %578 = vmatpush.bf16.msra.mxu0 %v1254_v24  ;;  %v1309_v11 = vld [vmem:[#allocation2 + $0x1c0] sm:$0xff]  ;;  %v49_v15 = vld [vmem:[%s1520_s0 + $0x68] sm:$0xff]  ;;  %v43_v18 = vld [vmem:[%s1520_s0 + $0x38] sm:$0xff]  ;;  %v58_v22 = vpack.c.bf16 %v50_v17, %v42_v16 }
  0x1f   :  { %592 = vmatpush.bf16.msra.mxu1 %v1262_v25  ;;  %v40_v12 = vld [vmem:[%s1520_s0 + $0x20] sm:$0xff]  ;;  %v51_v19 = vld [vmem:[%s1520_s0 + $0x78] sm:$0xff]  ;;  %v57_v21 = vpack.c.bf16 %v49_v15, %v41_v14 }
  0x20   :  { %606 = vmatpush.bf16.msra.mxu2 %v1270_v26  ;;  %v48_v13 = vld [vmem:[%s1520_s0 + $0x60] sm:$0xff]  ;;  %v59_v23 = vpack.c.bf16 %v51_v19, %v43_v18  ;;  %v1324_v26 = vld [vmem:[%s1522_s2 + $0x38] sm:$0xff] }
  0x21   :  { %620 = vmatpush.bf16.msra.mxu3 %v1278_v27  ;;  %v56_v20 = vpack.c.bf16 %v48_v13, %v40_v12  ;;  %v1321_v35 = vld [vmem:[%s1522_s2 + $0x20] sm:$0xff]  ;;  %v1320_v41 = vld [vmem:[%s1522_s2 + $0x18] sm:$0xff] }
  0x22   :  { %579 = vmatpush.bf16.msra.mxu0 %v1253_v28 }
  0x23   :  { %593 = vmatpush.bf16.msra.mxu1 %v1261_v29  ;;  %v1323_v29 = vld [vmem:[%s1522_s2 + $0x30] sm:$0xff] }
  0x24   :  { %607 = vmatpush.bf16.msra.mxu2 %v1269_v30 }
  0x25   :  { %621 = vmatpush.bf16.msra.mxu3 %v1277_v31  ;;  %580 = vmatmul.bf16.vlgmr.msra.gmra.mxu0 %v52_v46 }
  0x26   :  { %628 = vmatpush.bf16.msrb.mxu0 %v1292_v32  ;;  %594 = vmatmul.bf16.vlgmr.msra.gmra.mxu1 %v53_v47  ;;  %v1322_v32 = vld [vmem:[%s1522_s2 + $0x28] sm:$0xff] }
  0x27   :  { %642 = vmatpush.bf16.msrb.mxu1 %v1300_v33  ;;  %608 = vmatmul.bf16.vlgmr.msra.gmra.mxu2 %v54_v44 }
  0x28   :  { %656 = vmatpush.bf16.msrb.mxu2 %v1308_v42  ;;  %622 = vmatmul.bf16.vlgmr.msra.gmra.mxu3 %v55_v45  ;;  %v1319_v45 = vld [vmem:[%s1522_s2 + $0x10] sm:$0xff] }
  0x29   :  { %670 = vmatpush.bf16.msrb.mxu3 %v1316_v43 }
  0x2a   :  { %629 = vmatpush.bf16.msrb.mxu0 %v1291_v48 }
  0x2b   :  { %643 = vmatpush.bf16.msrb.mxu1 %v1299_v49 }
  0x2c   :  { %657 = vmatpush.bf16.msrb.mxu2 %v1307_v50 }
  0x2d   :  { %671 = vmatpush.bf16.msrb.mxu3 %v1315_v51 }
  0x2e   :  { %630 = vmatpush.bf16.msrb.mxu0 %v1290_v52  ;;  %v1318_v52 = vld [vmem:[%s1522_s2 + $0x8] sm:$0xff] }
  0x2f   :  { %644 = vmatpush.bf16.msrb.mxu1 %v1298_v53 }
  0x30   :  { %658 = vmatpush.bf16.msrb.mxu2 %v1306_v54 }
  0x31   :  { %672 = vmatpush.bf16.msrb.mxu3 %v1314_v55  ;;  %v1317_v55 = vld [vmem:[%s1522_s2] sm:$0xff] }
  0x32   :  { %631 = vmatpush.bf16.msrb.mxu0 %v1289_v56 }
  0x33   :  { %645 = vmatpush.bf16.msrb.mxu1 %v1297_v57 }
  0x34   :  { %659 = vmatpush.bf16.msrb.mxu2 %v1305_v58 }
  0x35   :  { %673 = vmatpush.bf16.msrb.mxu3 %v1313_v59 }
  0x36   :  { %632 = vmatpush.bf16.msrb.mxu0 %v1288_v60 }
  0x37   :  { %646 = vmatpush.bf16.msrb.mxu1 %v1296_v61 }
  0x38   :  { %660 = vmatpush.bf16.msrb.mxu2 %v1304_v62 }
  0x39   :  { %674 = vmatpush.bf16.msrb.mxu3 %v1312_v63 }
  0x3a   :  { %633 = vmatpush.bf16.msrb.mxu0 %v1287_v0 }
  0x3b   :  { %647 = vmatpush.bf16.msrb.mxu1 %v1295_v1 }
  0x3c   :  { %661 = vmatpush.bf16.msrb.mxu2 %v1303_v2 }
  0x3d   :  { %675 = vmatpush.bf16.msrb.mxu3 %v1311_v3 }
  0x3e   :  { %634 = vmatpush.bf16.msrb.mxu0 %v1286_v4 }
  0x3f   :  { %648 = vmatpush.bf16.msrb.mxu1 %v1294_v5 }
  0x40   :  { %662 = vmatpush.bf16.msrb.mxu2 %v1302_v6 }
  0x41   :  { %676 = vmatpush.bf16.msrb.mxu3 %v1310_v7 }
  0x42   :  { %635 = vmatpush.bf16.msrb.mxu0 %v1285_v8 }
  0x43   :  { %649 = vmatpush.bf16.msrb.mxu1 %v1293_v9 }
  0x44   :  { %663 = vmatpush.bf16.msrb.mxu2 %v1301_v10 }
  0x45   :  { %677 = vmatpush.bf16.msrb.mxu3 %v1309_v11  ;;  %636 = vmatmul.bf16.vlgmr.msrb.gmra.mxu0 %v56_v20 }
  0x46   :  { %650 = vmatmul.bf16.vlgmr.msrb.gmra.mxu1 %v57_v21  ;;  %787 = vmatpush.bf16.msra.mxu0 %v1324_v26  ;;  %v1331_v26 = vld [vmem:[%s1523_s3 + $0x30] sm:$0xff] }
  0x47   :  { %664 = vmatmul.bf16.vlgmr.msrb.gmra.mxu2 %v58_v22 }
  0x48   :  { %678 = vmatmul.bf16.vlgmr.msrb.gmra.mxu3 %v59_v23 }
  0x4a   :  { %788 = vmatpush.bf16.msra.mxu0 %v1323_v29  ;;  %v1328_v29 = vld [vmem:[%s1523_s3 + $0x18] sm:$0xff] }
  0x4e   :  { %789 = vmatpush.bf16.msra.mxu0 %v1322_v32 }
  0x52   :  { %790 = vmatpush.bf16.msra.mxu0 %v1321_v35 }
  0x56   :  { %791 = vmatpush.bf16.msra.mxu0 %v1320_v41 }
  0x5a   :  { %792 = vmatpush.bf16.msra.mxu0 %v1319_v45 }
  0x5e   :  { %793 = vmatpush.bf16.msra.mxu0 %v1318_v52 }
  0x62   :  { %794 = vmatpush.bf16.msra.mxu0 %v1317_v55 }
  0xa2   :  { %v581_v24 = vpop.f32.mrf.mxu0 }
  0xa3   :  { %v595_v25 = vpop.f32.mrf.mxu1 }
  0xa4   :  { %v596_v30 = vadd.f32 %v595_v25, %v581_v24  ;;  %v1332_v25 = vld [vmem:[%s1523_s3 + $0x38] sm:$0xff] }
  0xa5   :  { %908 = vmatpush.bf16.msra.mxu1 %v1332_v25 }
  0xa9   :  { %909 = vmatpush.bf16.msra.mxu1 %v1331_v26 }
  0xaa   :  { %v609_v27 = vpop.f32.mrf.mxu2  ;;  %v583_v31 = vpop.f32.mrf.mxu0 }
  0xab   :  { %v623_v28 = vpop.f32.mrf.mxu3  ;;  %v597_v33 = vpop.f32.mrf.mxu1  ;;  %v610_v34 = vadd.f32 %v609_v27, %v596_v30  ;;  %v1330_v27 = vld [vmem:[%s1523_s3 + $0x28] sm:$0xff]  ;;  %v1327_v30 = vld [vmem:[%s1523_s3 + $0x10] sm:$0xff] }
  0xac   :  { %v598_v39 = vadd.f32 %v597_v33, %v583_v31  ;;  %v1326_v31 = vld [vmem:[%s1523_s3 + $0x8] sm:$0xff]  ;;  %v1325_v33 = vld [vmem:[%s1523_s3] sm:$0xff] }
  0xad   :  { %v624_v38 = vadd.f32 %v623_v28, %v610_v34  ;;  %910 = vmatpush.bf16.msra.mxu1 %v1330_v27  ;;  %v1329_v28 = vld [vmem:[%s1523_s3 + $0x20] sm:$0xff] }
  0xb1   :  { %911 = vmatpush.bf16.msra.mxu1 %v1329_v28 }
  0xb2   :  { %v611_v36 = vpop.f32.mrf.mxu2 }
  0xb3   :  { %v625_v37 = vpop.f32.mrf.mxu3  ;;  %v612_v44 = vadd.f32 %v611_v36, %v598_v39 }
  0xb5   :  { %v626_v49 = vadd.f32 %v625_v37, %v612_v44  ;;  %912 = vmatpush.bf16.msra.mxu1 %v1328_v29 }
  0xb9   :  { %913 = vmatpush.bf16.msra.mxu1 %v1327_v30 }
  0xbd   :  { %914 = vmatpush.bf16.msra.mxu1 %v1326_v31 }
  0xc1   :  { %915 = vmatpush.bf16.msra.mxu1 %v1325_v33 }
  0xc2   :  { %v637_v40 = vpop.f32.mrf.mxu0 }
  0xc3   :  { %v638_v42 = vadd.f32 %v637_v40, %v624_v38  ;;  %v651_v43 = vpop.f32.mrf.mxu1 }
  0xc5   :  { %v652_v46 = vadd.f32 %v651_v43, %v638_v42 }
  0xca   :  { %v665_v47 = vpop.f32.mrf.mxu2  ;;  %v639_v51 = vpop.f32.mrf.mxu0 }
  0xcb   :  { %v679_v48 = vpop.f32.mrf.mxu3  ;;  %v666_v50 = vadd.f32 %v665_v47, %v652_v46  ;;  %v640_v54 = vadd.f32 %v639_v51, %v626_v49  ;;  %v653_v57 = vpop.f32.mrf.mxu1 }
  0xcd   :  { %v680_v53 = vadd.f32 %v679_v48, %v666_v50  ;;  %v654_v58 = vadd.f32 %v653_v57, %v640_v54 }
  0xcf   :  { %v1185_v56 = vmul.f32 -1.442695, %v680_v53 }
  0xd1   :  { %1337 = vpow2.f32 %v1185_v56 }
  0xd2   :  { %v667_v59 = vpop.f32.mrf.mxu2 }
  0xd3   :  { %v668_v60 = vadd.f32 %v667_v59, %v654_v58  ;;  %v681_v61 = vpop.f32.mrf.mxu3 }
  0xd5   :  { %v682_v62 = vadd.f32 %v681_v61, %v668_v60 }
  0xd7   :  { %v1338_v63 = vpop.eup %1337  ;;  %v1186_v0 = vmul.f32 -1.442695, %v682_v62  ;;  %v1336_v62 = vld [vmem:[%s1524_s4] ss:$0 sm:$0xff] }
  0xd8   :  { %v690_v1 = vadd.f32 1.0, %v1338_v63 }
  0xd9   :  { %1339 = vpow2.f32 %v1186_v0 }
  0xda   :  { %1341 = vrcp.f32 %v690_v1  ;;  %vm697_vm1 = vweird.f32 %v690_v1  ;;  %v703_v12 = vand.u32 2147483648, %v690_v1  ;;  %v701_v14 = vand.u32 2147483647, %v690_v1 }
  0xdc   :  { %v704_v19 = vor.u32 1.1754944e-38, %v703_v12  ;;  %vm702_vm6 = vcmp.eq.f32.partialorder %v701_v14, 8.507059e+37 }
  0xdf   :  { %v1340_v2 = vpop.eup %1339 }
  0xe0   :  { %v1342_v3 = vpop.eup %1341  ;;  %v691_v4 = vadd.f32 1.0, %v1340_v2 }
  0xe1   :  { %v693_v5 = vmul.f32 %v1342_v3, %v690_v1  ;;  %vm698_vm0 = vweird.f32 %v1342_v3 }
  0xe2   :  { %1343 = vrcp.f32 %v691_v4  ;;  %v718_v13 = vand.u32 2147483648, %v691_v4  ;;  %v716_v16 = vand.u32 2147483647, %v691_v4  ;;  %vm699_vm3 = vmor %vm697_vm1, %vm698_vm0  ;;  %vm712_vm4 = vweird.f32 %v691_v4 }
  0xe3   :  { %v694_v6 = vsub.f32 1.0, %v693_v5 }
  0xe4   :  { %v719_v20 = vor.u32 1.1754944e-38, %v718_v13  ;;  %vm717_vm7 = vcmp.eq.f32.partialorder %v716_v16, 8.507059e+37 }
  0xe5   :  { %v695_v7 = vmul.f32 %v1342_v3, %v694_v6 }
  0xe7   :  { %v696_v11 = vadd.f32 %v1342_v3, %v695_v7 }
  0xe8   :  { %v1344_v8 = vpop.eup %1343 }
  0xe9   :  { %v708_v9 = vmul.f32 %v1344_v8, %v691_v4  ;;  %vm713_vm2 = vweird.f32 %v1344_v8  ;;  %v700_v17 = vsel %vm699_vm3, %v1342_v3, %v696_v11 }
  0xea   :  { %vm714_vm5 = vmor %vm712_vm4, %vm713_vm2  ;;  %v705_v22 = vsel %vm702_vm6, %v704_v19, %v700_v17 }
  0xeb   :  { %v709_v10 = vsub.f32 1.0, %v708_v9 }
  0xed   :  { %v710_v15 = vmul.f32 %v1344_v8, %v709_v10 }
  0xef   :  { %v711_v18 = vadd.f32 %v1344_v8, %v710_v15 }
  0xf1   :  { %v715_v21 = vsel %vm714_vm5, %v1344_v8, %v711_v18 }
  0xf2   :  { %v720_v23 = vsel %vm717_vm7, %v719_v20, %v715_v21 }
  0xf3   :  { %v722_v24 = vpack.c.bf16 %v720_v23, %v705_v22 }
  0xf5   :  { %795 = vmatmul.bf16.vlgmr.msra.gmra.mxu0 %v722_v24 }
 0x172   :  { %v796_v32 = vpop.f32.mrf.mxu0 }
 0x173   :  { %v1219_v34 = vmul.f32 -1.442695, %v796_v32 }
 0x175   :  { %1345 = vpow2.f32 %v1219_v34 }
 0x17a   :  { %v798_v35 = vpop.f32.mrf.mxu0 }
 0x17b   :  { %v1346_v36 = vpop.eup %1345  ;;  %v1220_v37 = vmul.f32 -1.442695, %v798_v35 }
 0x17c   :  { %v807_v38 = vadd.f32 1.0, %v1346_v36 }
 0x17d   :  { %1347 = vpow2.f32 %v1220_v37 }
 0x17e   :  { %1349 = vrcp.f32 %v807_v38  ;;  %vm814_vm9 = vweird.f32 %v807_v38  ;;  %v820_v49 = vand.u32 2147483648, %v807_v38  ;;  %v818_v52 = vand.u32 2147483647, %v807_v38 }
 0x180   :  { %v821_v56 = vor.u32 1.1754944e-38, %v820_v49  ;;  %vm819_vm14 = vcmp.eq.f32.partialorder %v818_v52, 8.507059e+37 }
 0x183   :  { %v1348_v39 = vpop.eup %1347 }
 0x184   :  { %v1350_v40 = vpop.eup %1349  ;;  %v808_v41 = vadd.f32 1.0, %v1348_v39 }
 0x185   :  { %v810_v42 = vmul.f32 %v1350_v40, %v807_v38  ;;  %vm815_vm8 = vweird.f32 %v1350_v40 }
 0x186   :  { %1351 = vrcp.f32 %v808_v41  ;;  %v835_v50 = vand.u32 2147483648, %v808_v41  ;;  %v833_v53 = vand.u32 2147483647, %v808_v41  ;;  %vm816_vm11 = vmor %vm814_vm9, %vm815_vm8  ;;  %vm829_vm12 = vweird.f32 %v808_v41 }
 0x187   :  { %v811_v43 = vsub.f32 1.0, %v810_v42 }
 0x188   :  { %v836_v57 = vor.u32 1.1754944e-38, %v835_v50  ;;  %vm834_vm15 = vcmp.eq.f32.partialorder %v833_v53, 8.507059e+37 }
 0x189   :  { %v812_v44 = vmul.f32 %v1350_v40, %v811_v43 }
 0x18b   :  { %v813_v48 = vadd.f32 %v1350_v40, %v812_v44 }
 0x18c   :  { %v1352_v45 = vpop.eup %1351 }
 0x18d   :  { %v825_v46 = vmul.f32 %v1352_v45, %v808_v41  ;;  %vm830_vm10 = vweird.f32 %v1352_v45  ;;  %v817_v54 = vsel %vm816_vm11, %v1350_v40, %v813_v48 }
 0x18e   :  { %vm831_vm13 = vmor %vm829_vm12, %vm830_vm10  ;;  %v822_v59 = vsel %vm819_vm14, %v821_v56, %v817_v54 }
 0x18f   :  { %v826_v47 = vsub.f32 1.0, %v825_v46 }
 0x191   :  { %v827_v51 = vmul.f32 %v1352_v45, %v826_v47 }
 0x193   :  { %v828_v55 = vadd.f32 %v1352_v45, %v827_v51 }
 0x195   :  { %v832_v58 = vsel %vm831_vm13, %v1352_v45, %v828_v55 }
 0x196   :  { %v837_v60 = vsel %vm834_vm15, %v836_v57, %v832_v58 }
 0x197   :  { %v839_v61 = vpack.c.bf16 %v837_v60, %v822_v59 }
 0x199   :  { %916 = vmatmul.bf16.vlgmr.msra.gmra.mxu1 %v839_v61 }
 0x216   :  { %v917_v63 = vpop.f32.mrf.mxu1 }
 0x217   :  { %v918_v0 = vadd.f32 %v1336_v62, %v917_v63 }
 0x219   :  { %922 = vst [vmem:[%s1525_s5] sm:$0xff] %v918_v0 }
 0x21e   :  { %v919_v1 = vpop.f32.mrf.mxu1 }
 0x21f   :  { %v920_v2 = vadd.f32 %v1336_v62, %v919_v1 }
 0x221   :  { %923 = vst [vmem:[%s1525_s5 + $0x8] sm:$0xff] %v920_v2 }
 0x222   :  { %928 = vsyncpa [#allocation3], 1 }

</bundles_post_ra>
